<compile_context>
chip_gen: v7x
topology: tpu7x:2x2x1
jax: 0.10.0
libtpu: 0.0.40
codegen_flags: <defaults>
</compile_context>

<pallas_src>
import functools

import jax
import jax.numpy as jnp
from jax.experimental import pallas as pl
from jax.experimental.pallas import tpu as pltpu


# ----------------------------------------------------------------------------
# Fused attention kernel: one batch block per grid step, all heads inside.
# ----------------------------------------------------------------------------
def _attention_kernel(x_ref, ctx_ref, wq_ref, wkv_ref, wo_ref, bo_ref, o_ref,
                      acc_ref, *, heads, dim_head, scale, n, m, batch_block):
    inner = heads * dim_head

    # Cast to bf16 in-kernel (2x MXU throughput); all accumulation stays f32.
    x = x_ref[...].astype(jnp.bfloat16)          # (Bb*n, dim)
    ctx = ctx_ref[...].astype(jnp.bfloat16)      # (Bb*m, dim)
    wq = wq_ref[...].astype(jnp.bfloat16)
    wkv = wkv_ref[...].astype(jnp.bfloat16)

    # Batch-independent projections for the whole batch block at once.
    # Fold the 1/sqrt(dh) scale into Q here (once), not per head.
    q = jnp.dot(x, wq, preferred_element_type=jnp.float32) * scale    # (Bb*n, inner)
    kv = jnp.dot(ctx, wkv, preferred_element_type=jnp.float32)        # (Bb*m, 2*inner)
    q_bf = q.astype(jnp.bfloat16)
    kv_bf = kv.astype(jnp.bfloat16)

    # Heads live in the lane dim -> static lane slices, no transposes.
    for b in range(batch_block):
        q_b = q_bf[b * n:(b + 1) * n, :]
        kv_b = kv_bf[b * m:(b + 1) * m, :]
        for h in range(heads):
            lo = h * dim_head
            hi = lo + dim_head
            qh = q_b[:, lo:hi]                        # (n, dh)
            kh = kv_b[:, lo:hi]                       # (m, dh)
            vh = kv_b[:, inner + lo:inner + hi]       # (m, dh)

            # 'nd,md->nm': contract last dims directly (K in stored layout).
            s = jax.lax.dot_general(
                qh, kh, (((1,), (1,)), ((), ())),
                preferred_element_type=jnp.float32)                    # (n, m)

            # Row-wise softmax in f32; denominator reciprocal on the EUP.
            s = s - jnp.max(s, axis=-1, keepdims=True)
            p = jnp.exp(s)
            p = p * pl.reciprocal(jnp.sum(p, axis=-1, keepdims=True),
                                  approx=True)

            oh = jnp.dot(p.astype(jnp.bfloat16), vh,
                         preferred_element_type=jnp.float32)           # (n, dh)
            # Collect heads into VMEM scratch; project once after the loop.
            acc_ref[b * n:(b + 1) * n, lo:hi] = oh

    # Single K=inner output projection for the whole batch block + bias.
    wo = wo_ref[...].astype(jnp.bfloat16)
    y = jnp.dot(acc_ref[...].astype(jnp.bfloat16), wo,
                preferred_element_type=jnp.float32) + bo_ref[...]      # (Bb*n, dim)
    o_ref[...] = y.astype(o_ref.dtype)


def _default_batch_block(B):
    """All-batch-in-one-step on 1-TC chips; 2-way split on v7x (2 TCs)."""
    try:
        kind = jax.devices()[0].device_kind.lower()
    except Exception:
        kind = ""
    if "v7" in kind and B % 2 == 0 and B >= 2:
        return B // 2
    return B


def attention_forward(x, wq, wkv, wo, bo, *, heads, dim_head,
                      context=None, kv_include_self=False, batch_block=None):
    """Pallas implementation of Attention.forward (Dropout = identity)."""
    if context is None:
        context = x
    if kv_include_self:
        # layout plumbing only; done once in the wrapper before the kernel.
        context = jnp.concatenate([x, context], axis=1)

    B, n, dim = x.shape
    m = context.shape[1]
    inner = heads * dim_head
    scale = dim_head ** -0.5

    if batch_block is None:
        batch_block = _default_batch_block(B)
    assert B % batch_block == 0, "batch must be divisible by batch_block"
    num_blocks = B // batch_block

    # Flatten batch into sublanes (free contiguous reshape in XLA) so the
    # projections see one (B*n, dim) operand; no dtype casts here (in-kernel).
    x2 = x.reshape(B * n, dim)
    ctx2 = context.reshape(B * m, dim)
    bo2 = bo.reshape(1, dim).astype(jnp.float32)

    kernel = functools.partial(_attention_kernel, heads=heads,
                               dim_head=dim_head, scale=scale,
                               n=n, m=m, batch_block=batch_block)

    bb_n = batch_block * n
    bb_m = batch_block * m

    # TODO(synk): output last dim (dim=32) < 128 lanes -> masked stores; fine at
    # this size.  For real ViT lengths, add a KV-tile grid axis with online
    # softmax (flash-style) before scaling n/m (v7x has only 64 MiB VMEM).
    out = pl.pallas_call(
        kernel,
        out_shape=jax.ShapeDtypeStruct((B * n, dim), jnp.float32),
        grid=(num_blocks,),
        in_specs=[
            pl.BlockSpec((bb_n, dim), lambda b: (b, 0)),
            pl.BlockSpec((bb_m, dim), lambda b: (b, 0)),
            pl.BlockSpec((dim, inner), lambda b: (0, 0)),
            pl.BlockSpec((dim, 2 * inner), lambda b: (0, 0)),
            pl.BlockSpec((inner, dim), lambda b: (0, 0)),
            pl.BlockSpec((1, dim), lambda b: (0, 0)),
        ],
        out_specs=pl.BlockSpec((bb_n, dim), lambda b: (b, 0)),
        scratch_shapes=[pltpu.VMEM((bb_n, inner), jnp.float32)],
        compiler_params=pltpu.CompilerParams(
            dimension_semantics=("parallel",)),   # 2-way split across v7x TCs
    )(x2, ctx2, wq, wkv, wo, bo2)

    return out.reshape(B, n, dim)


# ----------------------------------------------------------------------------
# Pure-JAX reference (matches the PyTorch module, f32 math)
# ----------------------------------------------------------------------------
def attention_reference(x, wq, wkv, wo, bo, *, heads, dim_head,
                        context=None, kv_include_self=False):
    if context is None:
        context = x
    if kv_include_self:
        context = jnp.concatenate([x, context], axis=1)
    B, n, _ = x.shape
    inner = heads * dim_head
    q = x @ wq
    kv = context @ wkv
    k, v = kv[..., :inner], kv[..., inner:]

    def split(t):
        return t.reshape(B, -1, heads, dim_head).transpose(0, 2, 1, 3)

    q, k, v = split(q), split(k), split(v)
    s = jnp.einsum('bhid,bhjd->bhij', q, k) * (dim_head ** -0.5)
    p = jax.nn.softmax(s, axis=-1)
    o = jnp.einsum('bhij,bhjd->bhid', p, v)
    o = o.transpose(0, 2, 1, 3).reshape(B, n, inner)
    return o @ wo + bo


# ----------------------------------------------------------------------------
# Demo
# ----------------------------------------------------------------------------
if __name__ == "__main__":
    B, n, dim = 2, 8, 32            # small shapes consistent with the module
    heads, dim_head = 4, 64         # nn.Module defaults
    inner = heads * dim_head

    key = jax.random.PRNGKey(0)
    kx, kq, kkv, ko, kb = jax.random.split(key, 5)
    x = jax.random.normal(kx, (B, n, dim), jnp.float32)
    wq = jax.random.normal(kq, (dim, inner), jnp.float32) * 0.05
    wkv = jax.random.normal(kkv, (dim, 2 * inner), jnp.float32) * 0.05
    wo = jax.random.normal(ko, (inner, dim), jnp.float32) * 0.05
    bo = jax.random.normal(kb, (dim,), jnp.float32) * 0.05

    fwd = jax.jit(functools.partial(attention_forward,
                                    heads=heads, dim_head=dim_head))
    out = fwd(x, wq, wkv, wo, bo)            # self-attention (context=None)
    jax.block_until_ready(out)

    ref = attention_reference(x, wq, wkv, wo, bo, heads=heads, dim_head=dim_head)
    assert out.shape == (B, n, dim)
    max_err = float(jnp.max(jnp.abs(out - ref)))
    # bf16 MXU operands + approx reciprocal vs f32 reference: tolerance is
    # intentional for inference-mode parity.
    assert max_err < 2e-2, f"max abs err too large: {max_err}"
    print("KERNEL_OK")
</pallas_src>

<mosaic_0001>
module attributes {stable_mosaic.version = 11 : i64} {
  func.func @_attention_kernel(%arg0: i32, %arg1: memref<16x32xf32, #tpu.memory_space<vmem>>, %arg2: memref<16x32xf32, #tpu.memory_space<vmem>>, %arg3: memref<32x256xf32, #tpu.memory_space<vmem>>, %arg4: memref<32x512xf32, #tpu.memory_space<vmem>>, %arg5: memref<256x32xf32, #tpu.memory_space<vmem>>, %arg6: memref<1x32xf32, #tpu.memory_space<vmem>>, %arg7: memref<16x32xf32, #tpu.memory_space<vmem>>, %arg8: memref<16x256xf32, #tpu.memory_space<vmem>>) attributes {dimension_semantics = [#tpu.dimension_semantics<parallel>], iteration_bounds = array<i64: 1>, scalar_prefetch = 0 : i64, scratch_operands = 1 : i64, tpu.core_type = #tpu.core_type<tc>, window_params = [{transform_indices = @transform_0, window_bounds = array<i64: 16, 32>}, {transform_indices = @transform_1, window_bounds = array<i64: 16, 32>}, {pipeline_mode = #tpu.pipeline_mode<synchronous>, transform_indices = @transform_2, window_bounds = array<i64: 32, 256>}, {pipeline_mode = #tpu.pipeline_mode<synchronous>, transform_indices = @transform_3, window_bounds = array<i64: 32, 512>}, {pipeline_mode = #tpu.pipeline_mode<synchronous>, transform_indices = @transform_4, window_bounds = array<i64: 256, 32>}, {pipeline_mode = #tpu.pipeline_mode<synchronous>, transform_indices = @transform_5, window_bounds = array<i64: 1, 32>}, {transform_indices = @transform_6, window_bounds = array<i64: 16, 32>}]} {
    %c0 = arith.constant 0 : index
    %c0_0 = arith.constant 0 : index
    %0 = vector.load %arg1[%c0, %c0_0] : memref<16x32xf32, #tpu.memory_space<vmem>>, vector<16x32xf32>
    %1 = arith.truncf %0 : vector<16x32xf32> to vector<16x32xbf16>
    %c0_1 = arith.constant 0 : index
    %c0_2 = arith.constant 0 : index
    %2 = vector.load %arg2[%c0_1, %c0_2] : memref<16x32xf32, #tpu.memory_space<vmem>>, vector<16x32xf32>
    %3 = arith.truncf %2 : vector<16x32xf32> to vector<16x32xbf16>
    %c0_3 = arith.constant 0 : index
    %c0_4 = arith.constant 0 : index
    %4 = vector.load %arg3[%c0_3, %c0_4] : memref<32x256xf32, #tpu.memory_space<vmem>>, vector<32x256xf32>
    %5 = arith.truncf %4 : vector<32x256xf32> to vector<32x256xbf16>
    %c0_5 = arith.constant 0 : index
    %c0_6 = arith.constant 0 : index
    %6 = vector.load %arg4[%c0_5, %c0_6] : memref<32x512xf32, #tpu.memory_space<vmem>>, vector<32x512xf32>
    %7 = arith.truncf %6 : vector<32x512xf32> to vector<32x512xbf16>
    %cst = arith.constant dense<0.000000e+00> : vector<16x256xf32>
    %8 = tpu.matmul %1, %5, %cst {dimension_numbers = #tpu.dot_dimension_numbers<[1], [0], [0], [1], [0, 0, 1, 1], [], []>} : vector<16x32xbf16>, vector<32x256xbf16>, vector<16x256xf32> -> vector<16x256xf32>
    %cst_7 = arith.constant 1.250000e-01 : f32
    %9 = vector.broadcast %cst_7 : f32 to vector<16x256xf32>
    %10 = arith.mulf %8, %9 : vector<16x256xf32>
    %cst_8 = arith.constant dense<0.000000e+00> : vector<16x512xf32>
    %11 = tpu.matmul %3, %7, %cst_8 {dimension_numbers = #tpu.dot_dimension_numbers<[1], [0], [0], [1], [0, 0, 1, 1], [], []>} : vector<16x32xbf16>, vector<32x512xbf16>, vector<16x512xf32> -> vector<16x512xf32>
    %12 = arith.truncf %10 : vector<16x256xf32> to vector<16x256xbf16>
    %13 = arith.truncf %11 : vector<16x512xf32> to vector<16x512xbf16>
    %14 = vector.extract_strided_slice %12 {offsets = [0, 0], sizes = [8, 256], strides = [1, 1]} : vector<16x256xbf16> to vector<8x256xbf16>
    %15 = vector.extract_strided_slice %13 {offsets = [0, 0], sizes = [8, 512], strides = [1, 1]} : vector<16x512xbf16> to vector<8x512xbf16>
    %16 = vector.extract_strided_slice %14 {offsets = [0, 0], sizes = [8, 64], strides = [1, 1]} : vector<8x256xbf16> to vector<8x64xbf16>
    %17 = vector.extract_strided_slice %15 {offsets = [0, 0], sizes = [8, 64], strides = [1, 1]} : vector<8x512xbf16> to vector<8x64xbf16>
    %18 = vector.extract_strided_slice %15 {offsets = [0, 256], sizes = [8, 64], strides = [1, 1]} : vector<8x512xbf16> to vector<8x64xbf16>
    %cst_9 = arith.constant dense<0.000000e+00> : vector<8x8xf32>
    %19 = tpu.matmul %16, %17, %cst_9 {dimension_numbers = #tpu.dot_dimension_numbers<[1], [1], [0], [0], [0, 0, 1, 0], [], []>} : vector<8x64xbf16>, vector<8x64xbf16>, vector<8x8xf32> -> vector<8x8xf32>
    %cst_10 = arith.constant dense<0xFF800000> : vector<8xf32>
    %20 = vector.multi_reduction <maximumf>, %19, %cst_10 [1] : vector<8x8xf32> to vector<8xf32>
    %21 = vector.shape_cast %20 : vector<8xf32> to vector<8x1xf32>
    %22 = vector.broadcast %21 : vector<8x1xf32> to vector<8x8xf32>
    %23 = arith.subf %19, %22 : vector<8x8xf32>
    %24 = math.exp %23 : vector<8x8xf32>
    %cst_11 = arith.constant dense<0.000000e+00> : vector<8xf32>
    %25 = vector.multi_reduction <add>, %24, %cst_11 [1] : vector<8x8xf32> to vector<8xf32>
    %26 = vector.shape_cast %25 : vector<8xf32> to vector<8x1xf32>
    %27 = tpu.reciprocal %26 {approx = true} : vector<8x1xf32> -> vector<8x1xf32>
    %28 = vector.broadcast %27 : vector<8x1xf32> to vector<8x8xf32>
    %29 = arith.mulf %24, %28 : vector<8x8xf32>
    %30 = arith.truncf %29 : vector<8x8xf32> to vector<8x8xbf16>
    %cst_12 = arith.constant dense<0.000000e+00> : vector<8x64xf32>
    %31 = tpu.matmul %30, %18, %cst_12 {dimension_numbers = #tpu.dot_dimension_numbers<[1], [0], [0], [1], [0, 0, 1, 1], [], []>} : vector<8x8xbf16>, vector<8x64xbf16>, vector<8x64xf32> -> vector<8x64xf32>
    %c0_13 = arith.constant 0 : index
    %c0_14 = arith.constant 0 : index
    %32 = vector.load %arg8[%c0_13, %c0_14] : memref<16x256xf32, #tpu.memory_space<vmem>>, vector<8x64xf32>
    tpu.vector_store %arg8[%c0_13, %c0_14], %31 {strides = array<i32>} : memref<16x256xf32, #tpu.memory_space<vmem>>, vector<8x64xf32>,
    %33 = vector.extract_strided_slice %14 {offsets = [0, 64], sizes = [8, 64], strides = [1, 1]} : vector<8x256xbf16> to vector<8x64xbf16>
    %34 = vector.extract_strided_slice %15 {offsets = [0, 64], sizes = [8, 64], strides = [1, 1]} : vector<8x512xbf16> to vector<8x64xbf16>
    %35 = vector.extract_strided_slice %15 {offsets = [0, 320], sizes = [8, 64], strides = [1, 1]} : vector<8x512xbf16> to vector<8x64xbf16>
    %cst_15 = arith.constant dense<0.000000e+00> : vector<8x8xf32>
    %36 = tpu.matmul %33, %34, %cst_15 {dimension_numbers = #tpu.dot_dimension_numbers<[1], [1], [0], [0], [0, 0, 1, 0], [], []>} : vector<8x64xbf16>, vector<8x64xbf16>, vector<8x8xf32> -> vector<8x8xf32>
    %cst_16 = arith.constant dense<0xFF800000> : vector<8xf32>
    %37 = vector.multi_reduction <maximumf>, %36, %cst_16 [1] : vector<8x8xf32> to vector<8xf32>
    %38 = vector.shape_cast %37 : vector<8xf32> to vector<8x1xf32>
    %39 = vector.broadcast %38 : vector<8x1xf32> to vector<8x8xf32>
    %40 = arith.subf %36, %39 : vector<8x8xf32>
    %41 = math.exp %40 : vector<8x8xf32>
    %cst_17 = arith.constant dense<0.000000e+00> : vector<8xf32>
    %42 = vector.multi_reduction <add>, %41, %cst_17 [1] : vector<8x8xf32> to vector<8xf32>
    %43 = vector.shape_cast %42 : vector<8xf32> to vector<8x1xf32>
    %44 = tpu.reciprocal %43 {approx = true} : vector<8x1xf32> -> vector<8x1xf32>
    %45 = vector.broadcast %44 : vector<8x1xf32> to vector<8x8xf32>
    %46 = arith.mulf %41, %45 : vector<8x8xf32>
    %47 = arith.truncf %46 : vector<8x8xf32> to vector<8x8xbf16>
    %cst_18 = arith.constant dense<0.000000e+00> : vector<8x64xf32>
    %48 = tpu.matmul %47, %35, %cst_18 {dimension_numbers = #tpu.dot_dimension_numbers<[1], [0], [0], [1], [0, 0, 1, 1], [], []>} : vector<8x8xbf16>, vector<8x64xbf16>, vector<8x64xf32> -> vector<8x64xf32>
    %c0_19 = arith.constant 0 : index
    %c64 = arith.constant 64 : index
    %49 = vector.load %arg8[%c0_19, %c64] : memref<16x256xf32, #tpu.memory_space<vmem>>, vector<8x64xf32>
    tpu.vector_store %arg8[%c0_19, %c64], %48 {strides = array<i32>} : memref<16x256xf32, #tpu.memory_space<vmem>>, vector<8x64xf32>,
    %50 = vector.extract_strided_slice %14 {offsets = [0, 128], sizes = [8, 64], strides = [1, 1]} : vector<8x256xbf16> to vector<8x64xbf16>
    %51 = vector.extract_strided_slice %15 {offsets = [0, 128], sizes = [8, 64], strides = [1, 1]} : vector<8x512xbf16> to vector<8x64xbf16>
    %52 = vector.extract_strided_slice %15 {offsets = [0, 384], sizes = [8, 64], strides = [1, 1]} : vector<8x512xbf16> to vector<8x64xbf16>
    %cst_20 = arith.constant dense<0.000000e+00> : vector<8x8xf32>
    %53 = tpu.matmul %50, %51, %cst_20 {dimension_numbers = #tpu.dot_dimension_numbers<[1], [1], [0], [0], [0, 0, 1, 0], [], []>} : vector<8x64xbf16>, vector<8x64xbf16>, vector<8x8xf32> -> vector<8x8xf32>
    %cst_21 = arith.constant dense<0xFF800000> : vector<8xf32>
    %54 = vector.multi_reduction <maximumf>, %53, %cst_21 [1] : vector<8x8xf32> to vector<8xf32>
    %55 = vector.shape_cast %54 : vector<8xf32> to vector<8x1xf32>
    %56 = vector.broadcast %55 : vector<8x1xf32> to vector<8x8xf32>
    %57 = arith.subf %53, %56 : vector<8x8xf32>
    %58 = math.exp %57 : vector<8x8xf32>
    %cst_22 = arith.constant dense<0.000000e+00> : vector<8xf32>
    %59 = vector.multi_reduction <add>, %58, %cst_22 [1] : vector<8x8xf32> to vector<8xf32>
    %60 = vector.shape_cast %59 : vector<8xf32> to vector<8x1xf32>
    %61 = tpu.reciprocal %60 {approx = true} : vector<8x1xf32> -> vector<8x1xf32>
    %62 = vector.broadcast %61 : vector<8x1xf32> to vector<8x8xf32>
    %63 = arith.mulf %58, %62 : vector<8x8xf32>
    %64 = arith.truncf %63 : vector<8x8xf32> to vector<8x8xbf16>
    %cst_23 = arith.constant dense<0.000000e+00> : vector<8x64xf32>
    %65 = tpu.matmul %64, %52, %cst_23 {dimension_numbers = #tpu.dot_dimension_numbers<[1], [0], [0], [1], [0, 0, 1, 1], [], []>} : vector<8x8xbf16>, vector<8x64xbf16>, vector<8x64xf32> -> vector<8x64xf32>
    %c0_24 = arith.constant 0 : index
    %c128 = arith.constant 128 : index
    %66 = vector.load %arg8[%c0_24, %c128] : memref<16x256xf32, #tpu.memory_space<vmem>>, vector<8x64xf32>
    tpu.vector_store %arg8[%c0_24, %c128], %65 {strides = array<i32>} : memref<16x256xf32, #tpu.memory_space<vmem>>, vector<8x64xf32>,
    %67 = vector.extract_strided_slice %14 {offsets = [0, 192], sizes = [8, 64], strides = [1, 1]} : vector<8x256xbf16> to vector<8x64xbf16>
    %68 = vector.extract_strided_slice %15 {offsets = [0, 192], sizes = [8, 64], strides = [1, 1]} : vector<8x512xbf16> to vector<8x64xbf16>
    %69 = vector.extract_strided_slice %15 {offsets = [0, 448], sizes = [8, 64], strides = [1, 1]} : vector<8x512xbf16> to vector<8x64xbf16>
    %cst_25 = arith.constant dense<0.000000e+00> : vector<8x8xf32>
    %70 = tpu.matmul %67, %68, %cst_25 {dimension_numbers = #tpu.dot_dimension_numbers<[1], [1], [0], [0], [0, 0, 1, 0], [], []>} : vector<8x64xbf16>, vector<8x64xbf16>, vector<8x8xf32> -> vector<8x8xf32>
    %cst_26 = arith.constant dense<0xFF800000> : vector<8xf32>
    %71 = vector.multi_reduction <maximumf>, %70, %cst_26 [1] : vector<8x8xf32> to vector<8xf32>
    %72 = vector.shape_cast %71 : vector<8xf32> to vector<8x1xf32>
    %73 = vector.broadcast %72 : vector<8x1xf32> to vector<8x8xf32>
    %74 = arith.subf %70, %73 : vector<8x8xf32>
    %75 = math.exp %74 : vector<8x8xf32>
    %cst_27 = arith.constant dense<0.000000e+00> : vector<8xf32>
    %76 = vector.multi_reduction <add>, %75, %cst_27 [1] : vector<8x8xf32> to vector<8xf32>
    %77 = vector.shape_cast %76 : vector<8xf32> to vector<8x1xf32>
    %78 = tpu.reciprocal %77 {approx = true} : vector<8x1xf32> -> vector<8x1xf32>
    %79 = vector.broadcast %78 : vector<8x1xf32> to vector<8x8xf32>
    %80 = arith.mulf %75, %79 : vector<8x8xf32>
    %81 = arith.truncf %80 : vector<8x8xf32> to vector<8x8xbf16>
    %cst_28 = arith.constant dense<0.000000e+00> : vector<8x64xf32>
    %82 = tpu.matmul %81, %69, %cst_28 {dimension_numbers = #tpu.dot_dimension_numbers<[1], [0], [0], [1], [0, 0, 1, 1], [], []>} : vector<8x8xbf16>, vector<8x64xbf16>, vector<8x64xf32> -> vector<8x64xf32>
    %c0_29 = arith.constant 0 : index
    %c192 = arith.constant 192 : index
    %83 = vector.load %arg8[%c0_29, %c192] : memref<16x256xf32, #tpu.memory_space<vmem>>, vector<8x64xf32>
    tpu.vector_store %arg8[%c0_29, %c192], %82 {strides = array<i32>} : memref<16x256xf32, #tpu.memory_space<vmem>>, vector<8x64xf32>,
    %84 = vector.extract_strided_slice %12 {offsets = [8, 0], sizes = [8, 256], strides = [1, 1]} : vector<16x256xbf16> to vector<8x256xbf16>
    %85 = vector.extract_strided_slice %13 {offsets = [8, 0], sizes = [8, 512], strides = [1, 1]} : vector<16x512xbf16> to vector<8x512xbf16>
    %86 = vector.extract_strided_slice %84 {offsets = [0, 0], sizes = [8, 64], strides = [1, 1]} : vector<8x256xbf16> to vector<8x64xbf16>
    %87 = vector.extract_strided_slice %85 {offsets = [0, 0], sizes = [8, 64], strides = [1, 1]} : vector<8x512xbf16> to vector<8x64xbf16>
    %88 = vector.extract_strided_slice %85 {offsets = [0, 256], sizes = [8, 64], strides = [1, 1]} : vector<8x512xbf16> to vector<8x64xbf16>
    %cst_30 = arith.constant dense<0.000000e+00> : vector<8x8xf32>
    %89 = tpu.matmul %86, %87, %cst_30 {dimension_numbers = #tpu.dot_dimension_numbers<[1], [1], [0], [0], [0, 0, 1, 0], [], []>} : vector<8x64xbf16>, vector<8x64xbf16>, vector<8x8xf32> -> vector<8x8xf32>
    %cst_31 = arith.constant dense<0xFF800000> : vector<8xf32>
    %90 = vector.multi_reduction <maximumf>, %89, %cst_31 [1] : vector<8x8xf32> to vector<8xf32>
    %91 = vector.shape_cast %90 : vector<8xf32> to vector<8x1xf32>
    %92 = vector.broadcast %91 : vector<8x1xf32> to vector<8x8xf32>
    %93 = arith.subf %89, %92 : vector<8x8xf32>
    %94 = math.exp %93 : vector<8x8xf32>
    %cst_32 = arith.constant dense<0.000000e+00> : vector<8xf32>
    %95 = vector.multi_reduction <add>, %94, %cst_32 [1] : vector<8x8xf32> to vector<8xf32>
    %96 = vector.shape_cast %95 : vector<8xf32> to vector<8x1xf32>
    %97 = tpu.reciprocal %96 {approx = true} : vector<8x1xf32> -> vector<8x1xf32>
    %98 = vector.broadcast %97 : vector<8x1xf32> to vector<8x8xf32>
    %99 = arith.mulf %94, %98 : vector<8x8xf32>
    %100 = arith.truncf %99 : vector<8x8xf32> to vector<8x8xbf16>
    %cst_33 = arith.constant dense<0.000000e+00> : vector<8x64xf32>
    %101 = tpu.matmul %100, %88, %cst_33 {dimension_numbers = #tpu.dot_dimension_numbers<[1], [0], [0], [1], [0, 0, 1, 1], [], []>} : vector<8x8xbf16>, vector<8x64xbf16>, vector<8x64xf32> -> vector<8x64xf32>
    %c8 = arith.constant 8 : index
    %c0_34 = arith.constant 0 : index
    %102 = vector.load %arg8[%c8, %c0_34] : memref<16x256xf32, #tpu.memory_space<vmem>>, vector<8x64xf32>
    tpu.vector_store %arg8[%c8, %c0_34], %101 {strides = array<i32>} : memref<16x256xf32, #tpu.memory_space<vmem>>, vector<8x64xf32>,
    %103 = vector.extract_strided_slice %84 {offsets = [0, 64], sizes = [8, 64], strides = [1, 1]} : vector<8x256xbf16> to vector<8x64xbf16>
    %104 = vector.extract_strided_slice %85 {offsets = [0, 64], sizes = [8, 64], strides = [1, 1]} : vector<8x512xbf16> to vector<8x64xbf16>
    %105 = vector.extract_strided_slice %85 {offsets = [0, 320], sizes = [8, 64], strides = [1, 1]} : vector<8x512xbf16> to vector<8x64xbf16>
    %cst_35 = arith.constant dense<0.000000e+00> : vector<8x8xf32>
    %106 = tpu.matmul %103, %104, %cst_35 {dimension_numbers = #tpu.dot_dimension_numbers<[1], [1], [0], [0], [0, 0, 1, 0], [], []>} : vector<8x64xbf16>, vector<8x64xbf16>, vector<8x8xf32> -> vector<8x8xf32>
    %cst_36 = arith.constant dense<0xFF800000> : vector<8xf32>
    %107 = vector.multi_reduction <maximumf>, %106, %cst_36 [1] : vector<8x8xf32> to vector<8xf32>
    %108 = vector.shape_cast %107 : vector<8xf32> to vector<8x1xf32>
    %109 = vector.broadcast %108 : vector<8x1xf32> to vector<8x8xf32>
    %110 = arith.subf %106, %109 : vector<8x8xf32>
    %111 = math.exp %110 : vector<8x8xf32>
    %cst_37 = arith.constant dense<0.000000e+00> : vector<8xf32>
    %112 = vector.multi_reduction <add>, %111, %cst_37 [1] : vector<8x8xf32> to vector<8xf32>
    %113 = vector.shape_cast %112 : vector<8xf32> to vector<8x1xf32>
    %114 = tpu.reciprocal %113 {approx = true} : vector<8x1xf32> -> vector<8x1xf32>
    %115 = vector.broadcast %114 : vector<8x1xf32> to vector<8x8xf32>
    %116 = arith.mulf %111, %115 : vector<8x8xf32>
    %117 = arith.truncf %116 : vector<8x8xf32> to vector<8x8xbf16>
    %cst_38 = arith.constant dense<0.000000e+00> : vector<8x64xf32>
    %118 = tpu.matmul %117, %105, %cst_38 {dimension_numbers = #tpu.dot_dimension_numbers<[1], [0], [0], [1], [0, 0, 1, 1], [], []>} : vector<8x8xbf16>, vector<8x64xbf16>, vector<8x64xf32> -> vector<8x64xf32>
    %c8_39 = arith.constant 8 : index
    %c64_40 = arith.constant 64 : index
    %119 = vector.load %arg8[%c8_39, %c64_40] : memref<16x256xf32, #tpu.memory_space<vmem>>, vector<8x64xf32>
    tpu.vector_store %arg8[%c8_39, %c64_40], %118 {strides = array<i32>} : memref<16x256xf32, #tpu.memory_space<vmem>>, vector<8x64xf32>,
    %120 = vector.extract_strided_slice %84 {offsets = [0, 128], sizes = [8, 64], strides = [1, 1]} : vector<8x256xbf16> to vector<8x64xbf16>
    %121 = vector.extract_strided_slice %85 {offsets = [0, 128], sizes = [8, 64], strides = [1, 1]} : vector<8x512xbf16> to vector<8x64xbf16>
    %122 = vector.extract_strided_slice %85 {offsets = [0, 384], sizes = [8, 64], strides = [1, 1]} : vector<8x512xbf16> to vector<8x64xbf16>
    %cst_41 = arith.constant dense<0.000000e+00> : vector<8x8xf32>
    %123 = tpu.matmul %120, %121, %cst_41 {dimension_numbers = #tpu.dot_dimension_numbers<[1], [1], [0], [0], [0, 0, 1, 0], [], []>} : vector<8x64xbf16>, vector<8x64xbf16>, vector<8x8xf32> -> vector<8x8xf32>
    %cst_42 = arith.constant dense<0xFF800000> : vector<8xf32>
    %124 = vector.multi_reduction <maximumf>, %123, %cst_42 [1] : vector<8x8xf32> to vector<8xf32>
    %125 = vector.shape_cast %124 : vector<8xf32> to vector<8x1xf32>
    %126 = vector.broadcast %125 : vector<8x1xf32> to vector<8x8xf32>
    %127 = arith.subf %123, %126 : vector<8x8xf32>
    %128 = math.exp %127 : vector<8x8xf32>
    %cst_43 = arith.constant dense<0.000000e+00> : vector<8xf32>
    %129 = vector.multi_reduction <add>, %128, %cst_43 [1] : vector<8x8xf32> to vector<8xf32>
    %130 = vector.shape_cast %129 : vector<8xf32> to vector<8x1xf32>
    %131 = tpu.reciprocal %130 {approx = true} : vector<8x1xf32> -> vector<8x1xf32>
    %132 = vector.broadcast %131 : vector<8x1xf32> to vector<8x8xf32>
    %133 = arith.mulf %128, %132 : vector<8x8xf32>
    %134 = arith.truncf %133 : vector<8x8xf32> to vector<8x8xbf16>
    %cst_44 = arith.constant dense<0.000000e+00> : vector<8x64xf32>
    %135 = tpu.matmul %134, %122, %cst_44 {dimension_numbers = #tpu.dot_dimension_numbers<[1], [0], [0], [1], [0, 0, 1, 1], [], []>} : vector<8x8xbf16>, vector<8x64xbf16>, vector<8x64xf32> -> vector<8x64xf32>
    %c8_45 = arith.constant 8 : index
    %c128_46 = arith.constant 128 : index
    %136 = vector.load %arg8[%c8_45, %c128_46] : memref<16x256xf32, #tpu.memory_space<vmem>>, vector<8x64xf32>
    tpu.vector_store %arg8[%c8_45, %c128_46], %135 {strides = array<i32>} : memref<16x256xf32, #tpu.memory_space<vmem>>, vector<8x64xf32>,
    %137 = vector.extract_strided_slice %84 {offsets = [0, 192], sizes = [8, 64], strides = [1, 1]} : vector<8x256xbf16> to vector<8x64xbf16>
    %138 = vector.extract_strided_slice %85 {offsets = [0, 192], sizes = [8, 64], strides = [1, 1]} : vector<8x512xbf16> to vector<8x64xbf16>
    %139 = vector.extract_strided_slice %85 {offsets = [0, 448], sizes = [8, 64], strides = [1, 1]} : vector<8x512xbf16> to vector<8x64xbf16>
    %cst_47 = arith.constant dense<0.000000e+00> : vector<8x8xf32>
    %140 = tpu.matmul %137, %138, %cst_47 {dimension_numbers = #tpu.dot_dimension_numbers<[1], [1], [0], [0], [0, 0, 1, 0], [], []>} : vector<8x64xbf16>, vector<8x64xbf16>, vector<8x8xf32> -> vector<8x8xf32>
    %cst_48 = arith.constant dense<0xFF800000> : vector<8xf32>
    %141 = vector.multi_reduction <maximumf>, %140, %cst_48 [1] : vector<8x8xf32> to vector<8xf32>
    %142 = vector.shape_cast %141 : vector<8xf32> to vector<8x1xf32>
    %143 = vector.broadcast %142 : vector<8x1xf32> to vector<8x8xf32>
    %144 = arith.subf %140, %143 : vector<8x8xf32>
    %145 = math.exp %144 : vector<8x8xf32>
    %cst_49 = arith.constant dense<0.000000e+00> : vector<8xf32>
    %146 = vector.multi_reduction <add>, %145, %cst_49 [1] : vector<8x8xf32> to vector<8xf32>
    %147 = vector.shape_cast %146 : vector<8xf32> to vector<8x1xf32>
    %148 = tpu.reciprocal %147 {approx = true} : vector<8x1xf32> -> vector<8x1xf32>
    %149 = vector.broadcast %148 : vector<8x1xf32> to vector<8x8xf32>
    %150 = arith.mulf %145, %149 : vector<8x8xf32>
    %151 = arith.truncf %150 : vector<8x8xf32> to vector<8x8xbf16>
    %cst_50 = arith.constant dense<0.000000e+00> : vector<8x64xf32>
    %152 = tpu.matmul %151, %139, %cst_50 {dimension_numbers = #tpu.dot_dimension_numbers<[1], [0], [0], [1], [0, 0, 1, 1], [], []>} : vector<8x8xbf16>, vector<8x64xbf16>, vector<8x64xf32> -> vector<8x64xf32>
    %c8_51 = arith.constant 8 : index
    %c192_52 = arith.constant 192 : index
    %153 = vector.load %arg8[%c8_51, %c192_52] : memref<16x256xf32, #tpu.memory_space<vmem>>, vector<8x64xf32>
    tpu.vector_store %arg8[%c8_51, %c192_52], %152 {strides = array<i32>} : memref<16x256xf32, #tpu.memory_space<vmem>>, vector<8x64xf32>,
    %c0_53 = arith.constant 0 : index
    %c0_54 = arith.constant 0 : index
    %154 = vector.load %arg5[%c0_53, %c0_54] : memref<256x32xf32, #tpu.memory_space<vmem>>, vector<256x32xf32>
    %155 = arith.truncf %154 : vector<256x32xf32> to vector<256x32xbf16>
    %c0_55 = arith.constant 0 : index
    %c0_56 = arith.constant 0 : index
    %156 = vector.load %arg8[%c0_55, %c0_56] : memref<16x256xf32, #tpu.memory_space<vmem>>, vector<16x256xf32>
    %157 = arith.truncf %156 : vector<16x256xf32> to vector<16x256xbf16>
    %cst_57 = arith.constant dense<0.000000e+00> : vector<16x32xf32>
    %158 = tpu.matmul %157, %155, %cst_57 {dimension_numbers = #tpu.dot_dimension_numbers<[1], [0], [0], [1], [0, 0, 1, 1], [], []>} : vector<16x256xbf16>, vector<256x32xbf16>, vector<16x32xf32> -> vector<16x32xf32>
    %c0_58 = arith.constant 0 : index
    %c0_59 = arith.constant 0 : index
    %159 = vector.load %arg6[%c0_58, %c0_59] : memref<1x32xf32, #tpu.memory_space<vmem>>, vector<1x32xf32>
    %160 = vector.broadcast %159 : vector<1x32xf32> to vector<16x32xf32>
    %161 = arith.addf %158, %160 : vector<16x32xf32>
    %c0_60 = arith.constant 0 : index
    %c0_61 = arith.constant 0 : index
    %162 = vector.load %arg7[%c0_60, %c0_61] : memref<16x32xf32, #tpu.memory_space<vmem>>, vector<16x32xf32>
    tpu.vector_store %arg7[%c0_60, %c0_61], %161 {strides = array<i32>} : memref<16x32xf32, #tpu.memory_space<vmem>>, vector<16x32xf32>,
    return
  }
  func.func @transform_0(%arg0: i32) -> (i32, i32) {
    %c0_i32 = arith.constant 0 : i32
    %c0_i32_0 = arith.constant 0 : i32
    return %arg0, %c0_i32 : i32, i32
  }
  func.func @transform_1(%arg0: i32) -> (i32, i32) {
    %c0_i32 = arith.constant 0 : i32
    %c0_i32_0 = arith.constant 0 : i32
    return %arg0, %c0_i32 : i32, i32
  }
  func.func @transform_2(%arg0: i32) -> (i32, i32) {
    %c0_i32 = arith.constant 0 : i32
    %c0_i32_0 = arith.constant 0 : i32
    %c0_i32_1 = arith.constant 0 : i32
    return %c0_i32, %c0_i32_0 : i32, i32
  }
  func.func @transform_3(%arg0: i32) -> (i32, i32) {
    %c0_i32 = arith.constant 0 : i32
    %c0_i32_0 = arith.constant 0 : i32
    %c0_i32_1 = arith.constant 0 : i32
    return %c0_i32, %c0_i32_0 : i32, i32
  }
  func.func @transform_4(%arg0: i32) -> (i32, i32) {
    %c0_i32 = arith.constant 0 : i32
    %c0_i32_0 = arith.constant 0 : i32
    %c0_i32_1 = arith.constant 0 : i32
    return %c0_i32, %c0_i32_0 : i32, i32
  }
  func.func @transform_5(%arg0: i32) -> (i32, i32) {
    %c0_i32 = arith.constant 0 : i32
    %c0_i32_0 = arith.constant 0 : i32
    %c0_i32_1 = arith.constant 0 : i32
    return %c0_i32, %c0_i32_0 : i32, i32
  }
  func.func @transform_6(%arg0: i32) -> (i32, i32) {
    %c0_i32 = arith.constant 0 : i32
    %c0_i32_0 = arith.constant 0 : i32
    return %arg0, %c0_i32 : i32, i32
  }
}

</mosaic_0001>

<bundles_post_ra>
// kernel: attention_forward.1
= control target key start
LH: loop header
LB: loop body
LE: loop exit
PB: predicated region body
PF: predicated region fallthrough
CT: control target
= control target key end

     0   :  { %v1462_v7 = vmov 0   ;;  %s1877_s0 = inlined_call_operand.vmem [shape: f32[16,32], index: 0, kind: input, shape index: {}, may-alias: {0,1}]   ;;  %s1878_s1 = inlined_call_operand.vmem [shape: f32[16,32], index: 1, kind: input, shape index: {}, may-alias: {0,1}]   ;;  %s1879_s2 = inlined_call_operand.vmem [shape: f32[32,256], index: 2, kind: input, shape index: {}]   ;;  %s1880_s3 = inlined_call_operand.vmem [shape: f32[32,512], index: 3, kind: input, shape index: {}]   ;;  %s1881_s4 = inlined_call_operand.vmem [shape: f32[256,32], index: 4, kind: input, shape index: {}]   ;;  %s1882_s5 = inlined_call_operand.vmem [shape: f32[1,32], index: 5, kind: input, shape index: {}]   ;;  %s1883_s6 = inlined_call_operand.hbm [shape: f32[16,32], index: 6, kind: output, shape index: {}]  }
   0x1   :  { %v32_v0 = vld [vmem:[%s1879_s2 + $0x8] sm:$0xff]  ;;  %v34_v1 = vld [vmem:[%s1879_s2 + $0x18] sm:$0xff]  ;;  %v31_v2 = vld [vmem:[%s1879_s2] sm:$0xff]  ;;  %103 = vmatprep.mubr.bf16.mxu0 %v1462_v7 }
   0x2   :  { %v40_v3 = vpack.c.bf16 %v34_v1, %v32_v0  ;;  %v33_v4 = vld [vmem:[%s1879_s2 + $0x10] sm:$0xff]  ;;  %v36_v5 = vld [vmem:[%s1879_s2 + $0x28] sm:$0xff]  ;;  %v38_v6 = vld [vmem:[%s1879_s2 + $0x38] sm:$0xff] }
   0x3   :  { %v39_v8 = vpack.c.bf16 %v33_v4, %v31_v2  ;;  %v42_v9 = vpack.c.bf16 %v38_v6, %v36_v5  ;;  %v35_v10 = vld [vmem:[%s1879_s2 + $0x20] sm:$0xff]  ;;  %v37_v11 = vld [vmem:[%s1879_s2 + $0x30] sm:$0xff]  ;;  %v44_v12 = vld [vmem:[%s1880_s3 + $0x8] sm:$0xff] }
   0x4   :  { %71 = vmatprep.subr.bf16.mxu0 %v40_v3  ;;  %v48_v13 = vld [vmem:[%s1880_s3 + $0x28] sm:$0xff]  ;;  %v41_v14 = vpack.c.bf16 %v37_v11, %v35_v10  ;;  %v25_v15 = vld [vmem:[%s1877_s0] sm:$0xff] }
   0x5   :  { %72 = vmatpush1.bf16.msra.mxu0 %v39_v8  ;;  %v26_v16 = vld [vmem:[%s1877_s0 + $0x8] sm:$0xff]  ;;  %v60_v17 = vpack.c.bf16 %v48_v13, %v44_v12  ;;  %v43_v18 = vld [vmem:[%s1880_s3] sm:$0xff] }
   0x6   :  { %73 = vmatprep.subr.bf16.mxu0 %v42_v9  ;;  %v47_v19 = vld [vmem:[%s1880_s3 + $0x20] sm:$0xff]  ;;  %v52_v20 = vld [vmem:[%s1880_s3 + $0x48] sm:$0xff] }
   0x7   :  { %v56_v21 = vld [vmem:[%s1880_s3 + $0x68] sm:$0xff] }
   0x8   :  { %11 = vsyncpa [#allocation4], 0  ;;  %v27_v22 = vpack.c.bf16 %v26_v16, %v25_v15  ;;  %vm67_vm0 = vcmask 261120   ;;  %v59_v23 = vpack.c.bf16 %v47_v19, %v43_v18  ;;  %v64_v24 = vpack.c.bf16 %v56_v21, %v52_v20  ;;  %v51_v25 = vld [vmem:[%s1880_s3 + $0x40] sm:$0xff]  ;;  %v29_v29 = vld [vmem:[%s1878_s1 + $0x8] sm:$0xff]  ;;  %s1466_s10 = smov [#allocation3]  }
   0x9   :  { %74 = vmatpush1.bf16.msra.mxu0 %v41_v14  ;;  %v55_v26 = vld [vmem:[%s1880_s3 + $0x60] sm:$0xff]  ;;  %v1463_v31 = vmov 0.0   ;;  %vm1464_vm1 = vmmov 0   ;;  %vm213_vm2 = vcmask 523264   ;;  %v46_v53 = vld [vmem:[%s1880_s3 + $0x18] sm:$0xff]  ;;  %v45_v55 = vld [vmem:[%s1880_s3 + $0x10] sm:$0xff] }
   0xa   :  { %121 = vmatprep.subr.bf16.mxu0 %v60_v17  ;;  %v63_v27 = vpack.c.bf16 %v55_v26, %v51_v25  ;;  %v28_v28 = vld [vmem:[%s1878_s1] sm:$0xff]  ;;  %1303 = vmatprep.subr.bf16.mxu1 %v1463_v31  ;;  %s1465_s1 = smov 64   ;;  %v50_v54 = vld [vmem:[%s1880_s3 + $0x38] sm:$0xff]  ;;  %v49_v57 = vld [vmem:[%s1880_s3 + $0x30] sm:$0xff]  ;;  %vm260_vm3 = vcmask 64512   ;;  %vm276_vm4 = vcmask 1043456  }
   0xb   :  { %v30_v30 = vpack.c.bf16 %v29_v29, %v28_v28  ;;  %1305 = vmatprep.mubr.msk.bf16.mxu1 %vm1464_vm1, %v1463_v31  ;;  %v62_v56 = vpack.c.bf16 %v50_v54, %v46_v53  ;;  %v54_v58 = vld [vmem:[%s1880_s3 + $0x58] sm:$0xff]  ;;  %v61_v60 = vpack.c.bf16 %v49_v57, %v45_v55  ;;  %v53_v62 = vld [vmem:[%s1880_s3 + $0x50] sm:$0xff]  ;;  %vm438_vm5 = vcmask 1048064   ;;  %s1218_s11 = sshll.u32 %s1466_s10, 4  ;;  %s1219_s11 = int_to_ptr.vmem [resolvable:$true] %s1218_s11 }
   0xc   :  { %1229 = vmatmul.mubr.msk.bf16.vlgmr.msra.gmra.mrb[0].mxu0 %vm67_vm0, %v27_v22  ;;  %v58_v59 = vld [vmem:[%s1880_s3 + $0x78] sm:$0xff]  ;;  %v57_v63 = vld [vmem:[%s1880_s3 + $0x70] sm:$0xff]  ;;  %s1438_s12 = scalar_lea.vmem %s1219_s11, 256  ;;  %p1443_p1 = scmp.lt.s32.totalorder %s1219_s11, %s1219_s11 }
   0xd   :  { %122 = vmatpush1.bf16.msra.mxu0 %v59_v23  ;;  %153 = vmatprep.mubr.bf16.mxu0 %v1462_v7  ;;  %v66_v61 = vpack.c.bf16 %v58_v59, %v54_v58  ;;  %v65_v0 = vpack.c.bf16 %v57_v63, %v53_v62  ;;  %p1439_p0 = scmp.ne.s32.totalorder %s1219_s11, %s1438_s12  ;;  %p1444_p2 = scmp.lt.s32.totalorder %s1438_s12, %s1438_s12 }
   0xe   :  { %123 = vmatprep.subr.bf16.mxu0 %v64_v24 }
   0xf   :  { %p1445_p3 = por %p1444_p2, %p1443_p1 }
  0x11   :  { %124 = vmatpush1.bf16.msra.mxu0 %v63_v27  ;;  %p1446_p4 = pnand %p1445_p3, %p1439_p0 }
  0x12   :  { %164 = vmatprep.subr.bf16.mxu0 %v62_v56 }
  0x14   :  { %1230 = vmatmul.mubr.msk.bf16.vlgmr.msra.gmra.mrb[4].mxu0 %vm67_vm0, %v30_v30 }
  0x15   :  { %196 = vmatprep.mubr.bf16.mxu0 %v1462_v7  ;;  %165 = vmatpush1.bf16.msra.mxu0 %v61_v60 }
  0x16   :  { %166 = vmatprep.subr.bf16.mxu0 %v66_v61 }
  0x19   :  { %167 = vmatpush1.bf16.msra.mxu0 %v65_v0 }
  0x1a   :  { %1309 = vmatprep.subr.bf16.mxu0 %v1463_v31 }
  0x1c   :  { %1231 = vmatmul.mubr.msk.bf16.vlgmr.msra.gmra.mrb[8].mxu0 %vm67_vm0, %v30_v30 }
  0x1d   :  { %1311 = vmatprep.mubr.msk.bf16.mxu0 %vm1464_vm1, %v1463_v31 }
  0xdf   :  { %v105_v32 = vpop.f32.mrb[0].mxu0 }
  0xe0   :  { %v107_v33 = vpop.f32.mrb[1].mxu0  ;;  %v114_v35 = vmul.f32 0.125, %v105_v32 }
  0xe1   :  { %v109_v34 = vpop.f32.mrb[2].mxu0  ;;  %v115_v38 = vmul.f32 0.125, %v107_v33 }
  0xe2   :  { %v116_v36 = vmul.f32 0.125, %v109_v34  ;;  %v111_v37 = vpop.f32.mrb[3].mxu0 }
  0xe3   :  { %v117_v39 = vmul.f32 0.125, %v111_v37 }
  0xe4   :  { %v1569_v40 = vpack.c.bf16 %v116_v36, %v114_v35 }
  0xe5   :  { %v1571_v41 = vpack.c.bf16 %v117_v39, %v115_v38 }
  0xe6   :  { %v663_v50 = vrot.slane %v1569_v40, 4 }
  0xe7   :  { %v155_v42 = vpop.f32.mrb[4].mxu0  ;;  %v886_v52 = vrot.slane %v1571_v41, 4 }
  0xe8   :  { %v157_v43 = vpop.f32.mrb[5].mxu0 }
  0xe9   :  { %v159_v44 = vpop.f32.mrb[6].mxu0 }
  0xea   :  { %v209_v45 = vpack.c.bf16 %v159_v44, %v155_v42  ;;  %v161_v46 = vpop.f32.mrb[7].mxu0 }
  0xeb   :  { %v1573_v47 = vpack.c.bf16 %v161_v46, %v157_v43 }
  0xec   :  { %325 = vrot.lane.b32.xlu0 %v209_v45, %s1465_s1  ;;  %v218_v48 = vsel %vm213_vm2, %v209_v45, 0  ;;  %v664_v49 = vrot.slane %v209_v45, 4 }
  0xed   :  { %1304 = vmatpush3.bf16.xpose.msra.mxu1 %v218_v48  ;;  %549 = vrot.lane.b32.xlu1 %v1573_v47, %s1465_s1  ;;  %v887_v51 = vrot.slane %v1573_v47, 4  ;;  %v444_v4 = vsel %vm213_vm2, %v1573_v47, 0 }
  0xee   :  { %1315 = vmatprep.subr.bf16.mxu1 %v1463_v31  ;;  %v669_v8 = vsel %vm213_vm2, %v664_v49, 0 }
  0xef   :  { %v892_v12 = vsel %vm213_vm2, %v887_v51, 0  ;;  %v198_v58 = vpop.f32.mrb[8].mxu0 }
  0xf0   :  { %322 = vrot.lane.b32.xlu0 %v1569_v40, %s1465_s1  ;;  %v200_v61 = vpop.f32.mrb[9].mxu0 }
  0xf1   :  { %546 = vrot.lane.b32.xlu1 %v1571_v41, %s1465_s1  ;;  %v202_v63 = vpop.f32.mrb[10].mxu0 }
  0xf4   :  { %773 = vrot.lane.b32.xlu0 %v664_v49, %s1465_s1  ;;  %1306 = vmatmul.mubr.msk.bf16.vlgmr.msra.gmra.mrb[0].mxu1 %vm213_vm2, %v1569_v40 }
  0xf5   :  { %771 = vrot.lane.b32.xlu1 %v663_v50, %s1465_s1  ;;  %1317 = vmatprep.mubr.msk.bf16.mxu1 %vm1464_vm1, %v1463_v31 }
  0xf8   :  { %996 = vrot.lane.b32.xlu0 %v887_v51, %s1465_s1 }
  0xf9   :  { %994 = vrot.lane.b32.xlu1 %v886_v52, %s1465_s1 }
 0x15e   :  { %v326_v1 = vpop.permute.xlu0 %325 }
 0x15f   :  { %v331_v2 = vsel %vm213_vm2, %v326_v1, 0  ;;  %v550_v5 = vpop.permute.xlu1 %549  ;;  %v204_v1 = vpop.f32.mrb[11].mxu0 }
 0x160   :  { %1316 = vmatpush3.bf16.xpose.msra.mxu1 %v331_v2  ;;  %v555_v6 = vsel %vm213_vm2, %v550_v5, 0  ;;  %v1675_v2 = vpack.c.bf16 %v202_v63, %v198_v58 }
 0x161   :  { %1327 = vmatprep.subr.bf16.mxu1 %v1463_v31 }
 0x162   :  { %v323_v3 = vpop.permute.xlu0 %322 }
 0x163   :  { %v547_v7 = vpop.permute.xlu1 %546 }
 0x166   :  { %v774_v9 = vpop.permute.xlu0 %773 }
 0x167   :  { %1318 = vmatmul.mubr.msk.bf16.vlgmr.msra.gmra.mrb[4].mxu1 %vm213_vm2, %v323_v3  ;;  %v779_v10 = vsel %vm213_vm2, %v774_v9, 0  ;;  %v772_v11 = vpop.permute.xlu1 %771  ;;  %v1677_v3 = vpack.c.bf16 %v204_v1, %v200_v61 }
 0x168   :  { %1328 = vmatpush3.bf16.xpose.msra.mxu1 %v444_v4  ;;  %1329 = vmatprep.mubr.msk.bf16.mxu1 %vm1464_vm1, %v1463_v31  ;;  %v278_v4 = vsel %vm276_vm4, %v1675_v2, 0 }
 0x169   :  { %1339 = vmatprep.subr.bf16.mxu1 %v1463_v31  ;;  %1310 = vmatpush3.bf16.msra.mxu0 %v278_v4 }
 0x16a   :  { %v997_v13 = vpop.permute.xlu0 %996  ;;  %1321 = vmatprep.subr.bf16.mxu0 %v1463_v31 }
 0x16b   :  { %v1002_v14 = vsel %vm213_vm2, %v997_v13, 0  ;;  %v995_v15 = vpop.permute.xlu1 %994 }
 0x16f   :  { %1330 = vmatmul.mubr.msk.bf16.vlgmr.msra.gmra.mrb[8].mxu1 %vm213_vm2, %v1571_v41 }
 0x170   :  { %1340 = vmatpush3.bf16.xpose.msra.mxu1 %v555_v6  ;;  %1341 = vmatprep.mubr.msk.bf16.mxu1 %vm1464_vm1, %v1463_v31 }
 0x171   :  { %1351 = vmatprep.subr.bf16.mxu1 %v1463_v31 }
 0x177   :  { %1342 = vmatmul.mubr.msk.bf16.vlgmr.msra.gmra.mrb[12].mxu1 %vm213_vm2, %v547_v7 }
 0x178   :  { %1352 = vmatpush3.bf16.xpose.msra.mxu1 %v669_v8  ;;  %1353 = vmatprep.mubr.msk.bf16.mxu1 %vm1464_vm1, %v1463_v31 }
 0x179   :  { %1363 = vmatprep.subr.bf16.mxu1 %v1463_v31 }
 0x17f   :  { %1354 = vmatmul.mubr.msk.bf16.vlgmr.msra.gmra.mrb[16].mxu1 %vm213_vm2, %v663_v50 }
 0x180   :  { %1364 = vmatpush3.bf16.xpose.msra.mxu1 %v779_v10  ;;  %1365 = vmatprep.mubr.msk.bf16.mxu1 %vm1464_vm1, %v1463_v31 }
 0x181   :  { %1375 = vmatprep.subr.bf16.mxu1 %v1463_v31 }
 0x187   :  { %1366 = vmatmul.mubr.msk.bf16.vlgmr.msra.gmra.mrb[20].mxu1 %vm213_vm2, %v772_v11 }
 0x188   :  { %1376 = vmatpush3.bf16.xpose.msra.mxu1 %v892_v12  ;;  %1377 = vmatprep.mubr.msk.bf16.mxu1 %vm1464_vm1, %v1463_v31 }
 0x189   :  { %1387 = vmatprep.subr.bf16.mxu1 %v1463_v31 }
 0x18f   :  { %1378 = vmatmul.mubr.msk.bf16.vlgmr.msra.gmra.mrb[24].mxu1 %vm213_vm2, %v886_v52 }
 0x190   :  { %1388 = vmatpush3.bf16.xpose.msra.mxu1 %v1002_v14  ;;  %1389 = vmatprep.mubr.msk.bf16.mxu1 %vm1464_vm1, %v1463_v31 }
 0x197   :  { %1390 = vmatmul.mubr.msk.bf16.vlgmr.msra.gmra.mrb[28].mxu1 %vm213_vm2, %v995_v15 }
 0x1c7   :  { %v254_v16 = vpop.f32.mrb[0].mxu1 }
 0x1c8   :  { %v1307_v17 = vpop.f32.mrb[1].mxu1  ;;  %v261_v18 = vsel %vm260_vm3, %v254_v16, -inf }
 0x1c9   :  { %v257_v19 = vpop.f32.mrb[2].mxu1  ;;  %262 = vmax.xlane.f32.xlu0 %v261_v18 }
 0x1ca   :  { %v1308_v20 = vpop.f32.mrb[3].mxu1 }
 0x23a   :  { %v367_v21 = vpop.f32.mrb[4].mxu1 }
 0x23b   :  { %v1319_v22 = vpop.f32.mrb[5].mxu1  ;;  %v373_v23 = vsel %vm260_vm3, %v367_v21, -inf }
 0x23c   :  { %v370_v24 = vpop.f32.mrb[6].mxu1  ;;  %374 = vmax.xlane.f32.xlu1 %v373_v23 }
 0x23d   :  { %v1320_v25 = vpop.f32.mrb[7].mxu1 }
 0x242   :  { %v480_v26 = vpop.f32.mrb[8].mxu1 }
 0x243   :  { %v1331_v27 = vpop.f32.mrb[9].mxu1  ;;  %v486_v28 = vsel %vm260_vm3, %v480_v26, -inf }
 0x244   :  { %487 = vmax.xlane.f32.xlu0 %v486_v28  ;;  %v483_v29 = vpop.f32.mrb[10].mxu1 }
 0x245   :  { %v1332_v30 = vpop.f32.mrb[11].mxu1 }
 0x24a   :  { %v591_v32 = vpop.f32.mrb[12].mxu1 }
 0x24b   :  { %v1343_v33 = vpop.f32.mrb[13].mxu1  ;;  %v597_v34 = vsel %vm260_vm3, %v591_v32, -inf }
 0x24c   :  { %598 = vmax.xlane.f32.xlu0 %v597_v34  ;;  %v594_v35 = vpop.f32.mrb[14].mxu1 }
 0x24d   :  { %v1344_v36 = vpop.f32.mrb[15].mxu1 }
 0x252   :  { %v1661_v37 = vpop.f32.mrb[16].mxu1 }
 0x253   :  { %v1355_v38 = vpop.f32.mrb[17].mxu1  ;;  %v711_v39 = vsel %vm260_vm3, %v1661_v37, -inf }
 0x254   :  { %712 = vmax.xlane.f32.xlu1 %v711_v39  ;;  %v708_v40 = vpop.f32.mrb[18].mxu1 }
 0x255   :  { %v1356_v41 = vpop.f32.mrb[19].mxu1 }
 0x256   :  { %v263_v42 = vpop.xlane.xlu0 %262 }
 0x257   :  { %v264_v43 = vsub.f32 %v254_v16, %v263_v42 }
 0x259   :  { %v265_v44 = vmul.f32 1.442695, %v264_v43 }
 0x25a   :  { %v1665_v45 = vpop.f32.mrb[20].mxu1 }
 0x25b   :  { %1406 = vpow2.f32 %v265_v44  ;;  %v1367_v46 = vpop.f32.mrb[21].mxu1  ;;  %v821_v47 = vsel %vm260_vm3, %v1665_v45, -inf }
 0x25c   :  { %822 = vmax.xlane.f32.xlu0 %v821_v47  ;;  %v818_v48 = vpop.f32.mrb[22].mxu1  ;;  %v946_v46 = vrot.slane %v1677_v3, 4 }
 0x25d   :  { %v1368_v49 = vpop.f32.mrb[23].mxu1 }
 0x262   :  { %v1669_v50 = vpop.f32.mrb[24].mxu1 }
 0x263   :  { %v1379_v51 = vpop.f32.mrb[25].mxu1  ;;  %v934_v52 = vsel %vm260_vm3, %v1669_v50, -inf }
 0x264   :  { %935 = vmax.xlane.f32.xlu1 %v934_v52  ;;  %v931_v53 = vpop.f32.mrb[26].mxu1 }
 0x265   :  { %v1407_v54 = vpop.eup %1406  ;;  %v1380_v55 = vpop.f32.mrb[27].mxu1 }
 0x266   :  { %v267_v56 = vsel %vm260_vm3, %v1407_v54, 0.0 }
 0x268   :  { %268 = vadd.xlane.f32.xlu1 %v267_v56  ;;  %v502_v56 = vsel %vm276_vm4, %v1677_v3, 0 }
 0x26a   :  { %v1038_v57 = vpop.f32.mrb[28].mxu1 }
 0x26b   :  { %v1391_v59 = vpop.f32.mrb[29].mxu1  ;;  %v1044_v60 = vsel %vm260_vm3, %v1038_v57, -inf }
 0x26c   :  { %1045 = vmax.xlane.f32.xlu0 %v1044_v60  ;;  %v1041_v62 = vpop.f32.mrb[30].mxu1 }
 0x26d   :  { %v1392_v0 = vpop.f32.mrb[31].mxu1 }
 0x2c9   :  { %v375_v5 = vpop.xlane.xlu1 %374 }
 0x2ca   :  { %v376_v6 = vsub.f32 %v367_v21, %v375_v5 }
 0x2cc   :  { %v377_v7 = vmul.f32 1.442695, %v376_v6 }
 0x2ce   :  { %1408 = vpow2.f32 %v377_v7 }
 0x2d1   :  { %v488_v8 = vpop.xlane.xlu0 %487 }
 0x2d2   :  { %v489_v9 = vsub.f32 %v480_v26, %v488_v8 }
 0x2d4   :  { %v490_v10 = vmul.f32 1.442695, %v489_v9 }
 0x2d6   :  { %1410 = vpow2.f32 %v490_v10 }
 0x2d8   :  { %v1409_v11 = vpop.eup %1408 }
 0x2d9   :  { %v599_v12 = vpop.xlane.xlu0 %598  ;;  %v379_v13 = vsel %vm260_vm3, %v1409_v11, 0.0 }
 0x2da   :  { %v600_v14 = vsub.f32 %v591_v32, %v599_v12  ;;  %380 = vadd.xlane.f32.xlu0 %v379_v13 }
 0x2dc   :  { %v601_v15 = vmul.f32 1.442695, %v600_v14  ;;  %v951_v14 = vsel %vm276_vm4, %v946_v46, 0 }
 0x2de   :  { %1412 = vpow2.f32 %v601_v15 }
 0x2e0   :  { %v1683_v16 = vpop.eup %1410 }
 0x2e1   :  { %v492_v17 = vsel %vm260_vm3, %v1683_v16, 0.0  ;;  %v713_v20 = vpop.xlane.xlu1 %712 }
 0x2e2   :  { %493 = vadd.xlane.f32.xlu1 %v492_v17  ;;  %v714_v24 = vsub.f32 %v1661_v37, %v713_v20 }
 0x2e4   :  { %v715_v28 = vmul.f32 1.442695, %v714_v24 }
 0x2e8   :  { %v1687_v18 = vpop.eup %1412 }
 0x2e9   :  { %v603_v19 = vsel %vm260_vm3, %v1687_v18, 0.0  ;;  %v823_v25 = vpop.xlane.xlu0 %822 }
 0x2ea   :  { %604 = vadd.xlane.f32.xlu0 %v603_v19  ;;  %v824_v29 = vsub.f32 %v1665_v45, %v823_v25  ;;  %v723_v45 = vrot.slane %v1675_v2, 4 }
 0x2ec   :  { %v825_v33 = vmul.f32 1.442695, %v824_v29  ;;  %v728_v0 = vsel %vm276_vm4, %v723_v45, 0 }
 0x2f1   :  { %v936_v21 = vpop.xlane.xlu1 %935 }
 0x2f2   :  { %v937_v32 = vsub.f32 %v1669_v50, %v936_v21 }
 0x2f3   :  { %610 = vrot.lane.b32.xlu1 %v1677_v3, %s1465_s1 }
 0x2f4   :  { %v938_v35 = vmul.f32 1.442695, %v937_v32  ;;  %v1109_v32 = vld [vmem:[%s1881_s4] sm:$0xff] }
 0x2f5   :  { %v269_v22 = vpop.xlane.xlu1 %268 }
 0x2f6   :  { %1414 = vrcp.f32 %v269_v22 }
 0x2f7   :  { %1416 = vpow2.f32 %v715_v28 }
 0x2f8   :  { %1418 = vpow2.f32 %v825_v33 }
 0x2f9   :  { %v1046_v30 = vpop.xlane.xlu0 %1045  ;;  %1420 = vpow2.f32 %v938_v35  ;;  %v1127_v35 = vld [vmem:[%s1881_s4 + $0x90] sm:$0xff] }
 0x2fa   :  { %v1047_v34 = vsub.f32 %v1038_v57, %v1046_v30  ;;  %v1126_v30 = vld [vmem:[%s1881_s4 + $0x88] sm:$0xff] }
 0x2fc   :  { %v1048_v36 = vmul.f32 1.442695, %v1047_v34  ;;  %v1110_v34 = vld [vmem:[%s1881_s4 + $0x8] sm:$0xff] }
 0x2fe   :  { %1422 = vpow2.f32 %v1048_v36  ;;  %v1128_v36 = vld [vmem:[%s1881_s4 + $0x98] sm:$0xff] }
 0x300   :  { %386 = vrot.lane.b32.xlu0 %v1675_v2, %s1465_s1  ;;  %v1415_v23 = vpop.eup %1414 }
 0x301   :  { %v271_v26 = vmul.f32 %v1415_v23, %v1407_v54  ;;  %v1417_v37 = vpop.eup %1416 }
 0x302   :  { %v717_v38 = vsel %vm260_vm3, %v1417_v37, 0.0  ;;  %v1702_v39 = vpop.eup %1418 }
 0x303   :  { %v272_v27 = vpack.c.bf16 %v271_v26, %v271_v26  ;;  %v1704_v40 = vpop.eup %1420  ;;  %v827_v41 = vsel %vm260_vm3, %v1702_v39, 0.0 }
 0x304   :  { %v940_v43 = vsel %vm260_vm3, %v1704_v40, 0.0 }
 0x305   :  { %1312 = vmatmul.mubr.msk.bf16.vlgmr.msra.gmra.mrb[12].mxu0 %vm260_vm3, %v272_v27 }
 0x306   :  { %1323 = vmatprep.mubr.msk.bf16.mxu0 %vm1464_vm1, %v1463_v31 }
 0x308   :  { %v1708_v42 = vpop.eup %1422 }
 0x309   :  { %v1050_v44 = vsel %vm260_vm3, %v1708_v42, 0.0 }
 0x317   :  { %718 = vadd.xlane.f32.xlu1 %v717_v38  ;;  %v1150_v38 = vpack.c.bf16 %v1128_v36, %v1127_v35 }
 0x31b   :  { %828 = vadd.xlane.f32.xlu1 %v827_v41  ;;  %v1129_v41 = vld [vmem:[%s1881_s4 + $0xa0] sm:$0xff] }
 0x31f   :  { %941 = vadd.xlane.f32.xlu1 %v940_v43  ;;  %1051 = vadd.xlane.f32.xlu0 %v1050_v44 }
 0x330   :  { %833 = vrot.lane.b32.xlu1 %v723_v45, %s1465_s1 }
 0x334   :  { %1056 = vrot.lane.b32.xlu1 %v946_v46, %s1465_s1 }
 0x367   :  { %v381_v47 = vpop.xlane.xlu0 %380 }
 0x368   :  { %1424 = vrcp.f32 %v381_v47  ;;  %v1113_v47 = vld [vmem:[%s1881_s4 + $0x20] sm:$0xff] }
 0x36f   :  { %v494_v48 = vpop.xlane.xlu1 %493 }
 0x370   :  { %1426 = vrcp.f32 %v494_v48  ;;  %v1114_v48 = vld [vmem:[%s1881_s4 + $0x28] sm:$0xff] }
 0x372   :  { %v1425_v49 = vpop.eup %1424 }
 0x373   :  { %v383_v51 = vmul.f32 %v1425_v49, %v1409_v11  ;;  %v611_v58 = vpop.permute.xlu1 %610 }
 0x374   :  { %v616_v61 = vsel %vm276_vm4, %v611_v58, 0  ;;  %v1134_v58 = vld [vmem:[%s1881_s4 + $0xc8] sm:$0xff] }
 0x375   :  { %v384_v54 = vpack.c.bf16 %v383_v51, %v383_v51  ;;  %v1132_v51 = vld [vmem:[%s1881_s4 + $0xb8] sm:$0xff] }
 0x377   :  { %v605_v50 = vpop.xlane.xlu0 %604 }
 0x378   :  { %1428 = vrcp.f32 %v605_v50  ;;  %v1131_v50 = vld [vmem:[%s1881_s4 + $0xb0] sm:$0xff] }
 0x37a   :  { %v1427_v55 = vpop.eup %1426 }
 0x37b   :  { %v387_v52 = vpop.permute.xlu0 %386  ;;  %v496_v57 = vmul.f32 %v1427_v55, %v1683_v16  ;;  %v1115_v55 = vld [vmem:[%s1881_s4 + $0x30] sm:$0xff] }
 0x37c   :  { %v392_v53 = vsel %vm276_vm4, %v387_v52, 0 }
 0x37d   :  { %1322 = vmatpush3.bf16.msra.mxu0 %v392_v53  ;;  %v497_v59 = vpack.c.bf16 %v496_v57, %v496_v57  ;;  %v1143_v53 = vpack.c.bf16 %v1114_v48, %v1113_v47  ;;  %v1133_v57 = vld [vmem:[%s1881_s4 + $0xc0] sm:$0xff] }
 0x37e   :  { %1333 = vmatprep.subr.bf16.mxu0 %v1463_v31 }
 0x380   :  { %1324 = vmatmul.mubr.msk.bf16.vlgmr.msra.gmra.mrb[16].mxu0 %vm260_vm3, %v384_v54  ;;  %v1152_v54 = vpack.c.bf16 %v1132_v51, %v1131_v50 }
 0x381   :  { %1334 = vmatpush3.bf16.msra.mxu0 %v502_v56  ;;  %1335 = vmatprep.mubr.msk.bf16.mxu0 %vm1464_vm1, %v1463_v31  ;;  %v1116_v56 = vld [vmem:[%s1881_s4 + $0x38] sm:$0xff] }
 0x382   :  { %1345 = vmatprep.subr.bf16.mxu0 %v1463_v31  ;;  %v1429_v60 = vpop.eup %1428 }
 0x383   :  { %v607_v62 = vmul.f32 %v1429_v60, %v1687_v18  ;;  %v1144_v60 = vpack.c.bf16 %v1116_v56, %v1115_v55 }
 0x385   :  { %v608_v63 = vpack.c.bf16 %v607_v62, %v607_v62  ;;  %v1153_v62 = vpack.c.bf16 %v1134_v58, %v1133_v57 }
 0x388   :  { %1336 = vmatmul.mubr.msk.bf16.vlgmr.msra.gmra.mrb[20].mxu0 %vm260_vm3, %v497_v59 }
 0x389   :  { %1346 = vmatpush3.bf16.msra.mxu0 %v616_v61  ;;  %1347 = vmatprep.mubr.msk.bf16.mxu0 %vm1464_vm1, %v1463_v31 }
 0x38a   :  { %1357 = vmatprep.subr.bf16.mxu0 %v1463_v31 }
 0x390   :  { %1348 = vmatmul.mubr.msk.bf16.vlgmr.msra.gmra.mrb[24].mxu0 %vm260_vm3, %v608_v63  ;;  %v1117_v63 = vld [vmem:[%s1881_s4 + $0x40] sm:$0xff] }
 0x391   :  { %1358 = vmatpush3.bf16.msra.mxu0 %v728_v0  ;;  %1359 = vmatprep.mubr.msk.bf16.mxu0 %vm1464_vm1, %v1463_v31  ;;  %v1118_v0 = vld [vmem:[%s1881_s4 + $0x48] sm:$0xff] }
 0x392   :  { %1369 = vmatprep.subr.bf16.mxu0 %v1463_v31 }
 0x3a4   :  { %v719_v1 = vpop.xlane.xlu1 %718 }
 0x3a5   :  { %1430 = vrcp.f32 %v719_v1 }
 0x3a8   :  { %v829_v2 = vpop.xlane.xlu1 %828 }
 0x3a9   :  { %1432 = vrcp.f32 %v829_v2 }
 0x3ac   :  { %v942_v3 = vpop.xlane.xlu1 %941  ;;  %v1052_v11 = vpop.xlane.xlu0 %1051 }
 0x3ad   :  { %1434 = vrcp.f32 %v942_v3  ;;  %v1145_v3 = vpack.c.bf16 %v1118_v0, %v1117_v63 }
 0x3ae   :  { %1436 = vrcp.f32 %v1052_v11 }
 0x3af   :  { %v1431_v4 = vpop.eup %1430 }
 0x3b0   :  { %v721_v5 = vmul.f32 %v1431_v4, %v1417_v37  ;;  %v834_v6 = vpop.permute.xlu1 %833  ;;  %v1141_v37 = vpack.c.bf16 %v1110_v34, %v1109_v32  ;;  %v1124_v32 = vld [vmem:[%s1881_s4 + $0x78] sm:$0xff] }
 0x3b1   :  { %v839_v9 = vsel %vm276_vm4, %v834_v6, 0 }
 0x3b2   :  { %v722_v7 = vpack.c.bf16 %v721_v5, %v721_v5 }
 0x3b3   :  { %v1433_v8 = vpop.eup %1432 }
 0x3b4   :  { %1360 = vmatmul.mubr.msk.bf16.vlgmr.msra.gmra.mrb[28].mxu0 %vm260_vm3, %v722_v7  ;;  %v831_v10 = vmul.f32 %v1433_v8, %v1702_v39  ;;  %v1057_v16 = vpop.permute.xlu1 %1056  ;;  %v1111_v39 = vld [vmem:[%s1881_s4 + $0x10] sm:$0xff] }
 0x3b5   :  { %1370 = vmatpush3.bf16.msra.mxu0 %v839_v9  ;;  %1371 = vmatprep.mubr.msk.bf16.mxu0 %vm1464_vm1, %v1463_v31  ;;  %v1062_v19 = vsel %vm276_vm4, %v1057_v16, 0  ;;  %v1120_v16 = vld [vmem:[%s1881_s4 + $0x58] sm:$0xff] }
 0x3b6   :  { %1381 = vmatprep.subr.bf16.mxu0 %v1463_v31  ;;  %v832_v12 = vpack.c.bf16 %v831_v10, %v831_v10 }
 0x3b7   :  { %v1435_v13 = vpop.eup %1434 }
 0x3b8   :  { %v944_v15 = vmul.f32 %v1435_v13, %v1704_v40  ;;  %v1437_v18 = vpop.eup %1436  ;;  %v1112_v40 = vld [vmem:[%s1881_s4 + $0x18] sm:$0xff] }
 0x3b9   :  { %v1054_v20 = vmul.f32 %v1437_v18, %v1708_v42  ;;  %v1130_v42 = vld [vmem:[%s1881_s4 + $0xa8] sm:$0xff]  ;;  %v1142_v44 = vpack.c.bf16 %v1112_v40, %v1111_v39  ;;  %v1136_v13 = vld [vmem:[%s1881_s4 + $0xd8] sm:$0xff] }
 0x3ba   :  { %v945_v17 = vpack.c.bf16 %v944_v15, %v944_v15  ;;  %v1151_v46 = vpack.c.bf16 %v1130_v42, %v1129_v41 }
 0x3bb   :  { %v1055_v21 = vpack.c.bf16 %v1054_v20, %v1054_v20  ;;  %v1138_v20 = vld [vmem:[%s1881_s4 + $0xe8] sm:$0xff] }
 0x3bc   :  { %1372 = vmatmul.mubr.msk.bf16.vlgmr.msra.gmra.mrb[32].mxu0 %vm260_vm3, %v832_v12  ;;  %v1135_v12 = vld [vmem:[%s1881_s4 + $0xd0] sm:$0xff] }
 0x3bd   :  { %1382 = vmatpush3.bf16.msra.mxu0 %v951_v14  ;;  %1383 = vmatprep.mubr.msk.bf16.mxu0 %vm1464_vm1, %v1463_v31  ;;  %v1119_v14 = vld [vmem:[%s1881_s4 + $0x50] sm:$0xff]  ;;  %v1154_v15 = vpack.c.bf16 %v1136_v13, %v1135_v12 }
 0x3be   :  { %1393 = vmatprep.subr.bf16.mxu0 %v1463_v31 }
 0x3c4   :  { %1384 = vmatmul.mubr.msk.bf16.vlgmr.msra.gmra.mrb[36].mxu0 %vm260_vm3, %v945_v17  ;;  %v1146_v17 = vpack.c.bf16 %v1120_v16, %v1119_v14 }
 0x3c5   :  { %1394 = vmatpush3.bf16.msra.mxu0 %v1062_v19  ;;  %1395 = vmatprep.mubr.msk.bf16.mxu0 %vm1464_vm1, %v1463_v31  ;;  %v1125_v31 = vld [vmem:[%s1881_s4 + $0x80] sm:$0xff] }
 0x3c6   :  { %v1149_v33 = vpack.c.bf16 %v1126_v30, %v1125_v31  ;;  %v1137_v19 = vld [vmem:[%s1881_s4 + $0xe0] sm:$0xff]  ;;  %v1123_v30 = vld [vmem:[%s1881_s4 + $0x70] sm:$0xff] }
 0x3c8   :  { %1281 = vmatprep.subr.bf16.mxu1 %v1149_v33  ;;  %v1148_v33 = vpack.c.bf16 %v1124_v32, %v1123_v30 }
 0x3c9   :  { %1282 = vmatpush3.bf16.msra.mxu1 %v1141_v37 }
 0x3ca   :  { %1283 = vmatprep.subr.bf16.mxu1 %v1150_v38 }
 0x3cc   :  { %1396 = vmatmul.mubr.msk.bf16.vlgmr.msra.gmra.mrb[40].mxu0 %vm260_vm3, %v1055_v21  ;;  %v1121_v21 = vld [vmem:[%s1881_s4 + $0x60] sm:$0xff] }
 0x3cd   :  { %1284 = vmatpush3.bf16.msra.mxu1 %v1142_v44 }
 0x3ce   :  { %1285 = vmatprep.subr.bf16.mxu1 %v1151_v46 }
 0x3d1   :  { %1286 = vmatpush3.bf16.msra.mxu1 %v1143_v53 }
 0x3d2   :  { %1287 = vmatprep.subr.bf16.mxu1 %v1152_v54 }
 0x3d5   :  { %1288 = vmatpush3.bf16.msra.mxu1 %v1144_v60 }
 0x3d6   :  { %1289 = vmatprep.subr.bf16.mxu1 %v1153_v62 }
 0x3d8   :  { %v314_v22 = vpop.f32.mrb[12].mxu0 }
 0x3d9   :  { %320 = vst.msk [vmem:[#allocation2] sm:$0xff] %vm213_vm2, %v314_v22  ;;  %v1313_v23 = vpop.f32.mrb[13].mxu0  ;;  %1290 = vmatpush3.bf16.msra.mxu1 %v1145_v3 }
 0x3da   :  { %v317_v24 = vpop.f32.mrb[14].mxu0  ;;  %1291 = vmatprep.subr.bf16.mxu1 %v1154_v15  ;;  %v1155_v23 = vpack.c.bf16 %v1138_v20, %v1137_v19 }
 0x3db   :  { %v1314_v25 = vpop.f32.mrb[15].mxu0  ;;  %v1122_v24 = vld [vmem:[%s1881_s4 + $0x68] sm:$0xff] }
 0x3dc   :  { %v1139_v25 = vld [vmem:[%s1881_s4 + $0xf0] sm:$0xff] }
 0x3dd   :  { %1292 = vmatpush3.bf16.msra.mxu1 %v1146_v17 }
 0x3de   :  { %1293 = vmatprep.subr.bf16.mxu1 %v1155_v23 }
 0x453   :  { %v428_v26 = vpop.f32.mrb[16].mxu0 }
 0x454   :  { %435 = vrot.lane.b32.xlu1 %v428_v26, %s1465_s1  ;;  %v1325_v27 = vpop.f32.mrb[17].mxu0  ;;  %v1140_v26 = vld [vmem:[%s1881_s4 + $0xf8] sm:$0xff] }
 0x455   :  { %v431_v28 = vpop.f32.mrb[18].mxu0 }
 0x456   :  { %v1326_v29 = vpop.f32.mrb[19].mxu0  ;;  %v1147_v28 = vpack.c.bf16 %v1122_v24, %v1121_v21 }
 0x457   :  { %v1156_v29 = vpack.c.bf16 %v1140_v26, %v1139_v25 }
 0x458   :  { %1294 = vmatpush3.bf16.msra.mxu1 %v1147_v28 }
 0x459   :  { %1295 = vmatprep.subr.bf16.mxu1 %v1156_v29 }
 0x45b   :  { %v538_v43 = vpop.f32.mrb[20].mxu0 }
 0x45c   :  { %544 = vst.msk [vmem:[#allocation2 + $0x8] sm:$0xff] %vm213_vm2, %v538_v43  ;;  %v1337_v45 = vpop.f32.mrb[21].mxu0  ;;  %1296 = vmatpush3.bf16.msra.mxu1 %v1148_v33 }
 0x45d   :  { %v541_v49 = vpop.f32.mrb[22].mxu0 }
 0x45e   :  { %v1338_v52 = vpop.f32.mrb[23].mxu0  ;;  %v1248_v49 = vld [vmem:[%s1882_s5] ss:$0 sm:$0xff] }
 0x463   :  { %v652_v59 = vpop.f32.mrb[24].mxu0 }
 0x464   :  { %659 = vrot.lane.b32.xlu1 %v652_v59, %s1465_s1  ;;  %v1349_v61 = vpop.f32.mrb[25].mxu0 }
 0x465   :  { %v655_v1 = vpop.f32.mrb[26].mxu0 }
 0x466   :  { %v1350_v2 = vpop.f32.mrb[27].mxu0 }
 0x487   :  { %v764_v4 = vpop.f32.mrb[28].mxu0 }
 0x488   :  { %770 = vst.msk [vmem:[#allocation2 + $0x10] sm:$0xff] %vm213_vm2, %v764_v4  ;;  %v1361_v5 = vpop.f32.mrb[29].mxu0 }
 0x489   :  { %v767_v6 = vpop.f32.mrb[30].mxu0 }
 0x48a   :  { %v1362_v7 = vpop.f32.mrb[31].mxu0 }
 0x48f   :  { %v875_v8 = vpop.f32.mrb[32].mxu0 }
 0x490   :  { %v1373_v9 = vpop.f32.mrb[33].mxu0 }
 0x491   :  { %v878_v10 = vpop.f32.mrb[34].mxu0 }
 0x492   :  { %v1374_v11 = vpop.f32.mrb[35].mxu0 }
 0x497   :  { %v987_v18 = vpop.f32.mrb[36].mxu0 }
 0x498   :  { %993 = vst.msk [vmem:[#allocation2 + $0x18] sm:$0xff] %vm213_vm2, %v987_v18  ;;  %v1385_v22 = vpop.f32.mrb[37].mxu0 }
 0x499   :  { %v990_v27 = vpop.f32.mrb[38].mxu0 }
 0x49a   :  { %v1386_v31 = vpop.f32.mrb[39].mxu0 }
 0x49f   :  { %v1098_v34 = vpop.f32.mrb[40].mxu0 }
 0x4a0   :  { %1105 = vrot.lane.b32.xlu1 %v1098_v34, %s1465_s1  ;;  %v1397_v35 = vpop.f32.mrb[41].mxu0 }
 0x4a1   :  { %v1101_v36 = vpop.f32.mrb[42].mxu0 }
 0x4a2   :  { %v1398_v37 = vpop.f32.mrb[43].mxu0 }
 0x4a4   :  { %882 = vrot.lane.b32.xlu1 %v875_v8, %s1465_s1 }
 0x4c6   :  { %v436_v38 = vpop.permute.xlu1 %435 }
 0x4c7   :  { %439 = vst.msk [vmem:[#allocation2] sm:$0xff] %vm438_vm5, %v436_v38 }
 0x4ce   :  { %v1157_v45 = vld [vmem:[#allocation2] sm:$0xff] }
 0x4d6   :  { %v660_v39 = vpop.permute.xlu1 %659 }
 0x4d7   :  { %662 = vst.msk [vmem:[#allocation2 + $0x8] sm:$0xff] %vm438_vm5, %v660_v39 }
 0x4de   :  { %v1158_v42 = vld [vmem:[#allocation2 + $0x8] sm:$0xff] }
 0x512   :  { %v1106_v40 = vpop.permute.xlu1 %1105 }
 0x513   :  { %1108 = vst.msk [vmem:[#allocation2 + $0x18] sm:$0xff] %vm438_vm5, %v1106_v40 }
 0x516   :  { %v883_v41 = vpop.permute.xlu1 %882 }
 0x517   :  { %885 = vst.msk [vmem:[#allocation2 + $0x10] sm:$0xff] %vm438_vm5, %v883_v41 }
 0x51a   :  { %v1160_v43 = vld [vmem:[#allocation2 + $0x18] sm:$0xff] }
 0x51b   :  { %v1162_v44 = vpack.c.bf16 %v1160_v43, %v1158_v42 }
 0x51d   :  { %1202 = vmatprep.mubr.bf16.mxu1 %v1162_v44 }
 0x51e   :  { %v1159_v46 = vld [vmem:[#allocation2 + $0x10] sm:$0xff] }
 0x51f   :  { %v1161_v47 = vpack.c.bf16 %v1159_v46, %v1157_v45 }
 0x521   :  { %1203 = vmatmul.mubr.bf16.vlgmr.msra.gmra.mrb[32].mxu1 %v1161_v47 }
 0x5f4   :  { %v1297_v48 = vpop.f32.mrb[32].mxu1 }
 0x5f5   :  { %v1298_v50 = vpop.f32.mrb[33].mxu1 }
 0x5f6   :  { %v1299_v51 = vadd.f32 %v1298_v50, %v1297_v48  ;;  %v1300_v52 = vpop.f32.mrb[34].mxu1 }
 0x5f7   :  { %v1301_v53 = vpop.f32.mrb[35].mxu1 }
 0x5f8   :  { %v1205_v54 = vadd.f32 %v1299_v51, %v1248_v49  ;;  %v1302_v55 = vadd.f32 %v1301_v53, %v1300_v52 }
 0x5fa   :  { %1211 = vst.msk [vmem:[#allocation3] sm:$0xff] %vm67_vm0, %v1205_v54  ;;  %v1208_v56 = vadd.f32 %v1302_v55, %v1248_v49 }
 0x5fc   :  { %1212 = vst.msk [vmem:[#allocation3 + $0x8] sm:$0xff] %vm67_vm0, %v1208_v56 }
 0x5fd   :  { %1449 = shalt.err (!%p1446_p4)
}
 0x5fe   :  { %s1450_s14 = scalar_lea.hbm %s1883_s6, 256 }
 0x5ff   :  { %p1451_p5 = scmp.ne.s32.totalorder %s1883_s6, %s1450_s14  ;;  %p1454_p6 = scmp.lt.u32.totalorder %s1450_s14, %s1883_s6 }
 0x601   :  { %p1456_p7 = pnand %p1454_p6, %p1451_p5 }
 0x603   :  { %1459 = shalt.err (!%p1456_p7)
}
 0x604   :  { %s1467_s19 = smov 128   ;;  %s1468_s20 = smov 8  }
 0x605   :  { %1224 = dma.vmem_to_hbm [thread:$0]  %s1219_s11, 256, %s1883_s6, [#allocation4], %s1467_s19, %s1467_s19, %s1468_s20  }
 0x606   :  { %1460 = dma.done.wait [#allocation4], 256  }
 0x607   :  { %1461 = vsyncadd [#allocation4], 4294967040 }
 0x608   :  { %1228 = vsyncpa [#allocation4], 1 }

</bundles_post_ra>
